<compile_context>
chip_gen: v7x
topology: tpu7x:2x2x1
jax: 0.10.0
libtpu: 0.0.40
codegen_flags: <defaults>
</compile_context>

<pallas_src>
import functools

import jax
import jax.numpy as jnp
from jax.experimental import pallas as pl
from jax.experimental.pallas import tpu as pltpu


def _round_up(x, m):
    return ((x + m - 1) // m) * m


# ----------------------------------------------------------------------------
# Fused edge encoder kernel: ||e|| + concat + Linear(4->H) + SiLU + Linear(H->D)
# + LayerNorm, all in one pass over the edge rows.
# ----------------------------------------------------------------------------
def _edge_mlp_ln_kernel(e_ref, w1_ref, b1_ref, w2_ref, b2_ref, g_ref, beta_ref, o_ref):
    e = e_ref[...].astype(jnp.float32)                      # [tm, 3]

    # ||e|| computed in-kernel (VPU mul-adds + sqrt); replaces XLA norm/concat
    # glue.  Padding rows of a partial last block may produce junk values, but
    # those rows are dropped by the partial-block writeback, never stored.
    e0 = e[:, 0:1]
    e1 = e[:, 1:2]
    e2 = e[:, 2:3]
    nrm = jnp.sqrt(e0 * e0 + e1 * e1 + e2 * e2)             # [tm, 1]

    # First linear (K = 4) as broadcast FMAs on the VPU instead of a K=4 MXU
    # contraction.
    w1 = w1_ref[...].astype(jnp.float32)                    # [4, hidden]
    h = b1_ref[...].astype(jnp.float32)                     # [1, hidden]
    h = h + e0 * w1[0:1, :]
    h = h + e1 * w1[1:2, :]
    h = h + e2 * w1[2:3, :]
    h = h + nrm * w1[3:4, :]                                # [tm, hidden]

    # SiLU (sigmoid goes to the EUP slot).
    h = h * jax.nn.sigmoid(h)

    # Second linear on the MXU, f32 accumulation.
    y = jnp.dot(h, w2_ref[...].astype(jnp.float32),
                preferred_element_type=jnp.float32)
    y = y + b2_ref[...].astype(jnp.float32)                 # [tm, d_out]

    # LayerNorm (biased variance, eps = 1e-5, matching torch.nn.LayerNorm).
    mu = jnp.mean(y, axis=-1, keepdims=True)
    var = jnp.mean((y - mu) ** 2, axis=-1, keepdims=True)
    y_hat = (y - mu) * jax.lax.rsqrt(var + 1e-5)

    o_ref[...] = (y_hat * g_ref[...].astype(jnp.float32)
                  + beta_ref[...].astype(jnp.float32)).astype(o_ref.dtype)


def edge_mlp_layernorm(edge_attr, w1, b1, w2, b2, gamma, beta, *,
                       tm=8192, out_dtype=None):
    """Fused edge embedding: edge_attr [E, 3] -> h_edge [E, edge_dim]."""
    e_rows, d_raw = edge_attr.shape
    assert d_raw == 3, "edge_attr must be [E, 3] relative position vectors"
    assert w1.shape[0] == 4, "edge MLP first layer expects 4 inputs (e, ||e||)"
    hidden = w1.shape[1]
    d_out = w2.shape[1]
    out_dtype = edge_attr.dtype if out_dtype is None else out_dtype

    # Big row tiles (fewer ~0.35us pipeline steps), but keep the row grid at
    # >= 2 steps so both v7x TensorCores get work; tm stays a multiple of 8.
    half_rows = _round_up(max(-(-e_rows // 2), 1), 8)
    tm = max(8, min(tm, half_rows))
    grid = (pl.cdiv(e_rows, tm),)

    return pl.pallas_call(
        _edge_mlp_ln_kernel,
        out_shape=jax.ShapeDtypeStruct((e_rows, d_out), out_dtype),
        grid_spec=pltpu.PrefetchScalarGridSpec(
            num_scalar_prefetch=0,
            grid=grid,
            in_specs=[
                pl.BlockSpec((tm, 3), lambda i: (i, 0)),          # raw edge_attr tile
                pl.BlockSpec((4, hidden), lambda i: (0, 0)),      # W1 (resident)
                pl.BlockSpec((1, hidden), lambda i: (0, 0)),      # b1
                pl.BlockSpec((hidden, d_out), lambda i: (0, 0)),  # W2 (resident)
                pl.BlockSpec((1, d_out), lambda i: (0, 0)),       # b2
                pl.BlockSpec((1, d_out), lambda i: (0, 0)),       # LN gamma
                pl.BlockSpec((1, d_out), lambda i: (0, 0)),       # LN beta
            ],
            out_specs=pl.BlockSpec((tm, d_out), lambda i: (i, 0)),
        ),
        compiler_params=pltpu.CompilerParams(
            dimension_semantics=("parallel",),
            # Lane padding of the narrow (tm,3)/(tm,32) tiles inflates VMEM;
            # raise the scoped limit so tm=8192 is safe on v5e's 16 MiB default.
            vmem_limit_bytes=32 * 1024 * 1024,
        ),
    )(edge_attr, w1, b1, w2, b2, gamma, beta)


# ----------------------------------------------------------------------------
# Node path: one-hot species -> precomputed embedding table (plain JAX, tiny).
# ----------------------------------------------------------------------------
def _mlp_ln_ref(x, p):
    """Plain-JAX MLP(Linear->SiLU->Linear) + LayerNorm (also the reference)."""
    h = x @ p["w1"] + p["b1"]
    h = h * jax.nn.sigmoid(h)
    y = h @ p["w2"] + p["b2"]
    mu = jnp.mean(y, axis=-1, keepdims=True)
    var = jnp.mean((y - mu) ** 2, axis=-1, keepdims=True)
    return (y - mu) / jnp.sqrt(var + 1e-5) * p["gamma"] + p["beta"]


def node_embedding_table(node_params, num_species):
    """MLP+LN of every one-hot species vector: [num_species, node_dim].

    Depends only on params — compute once and reuse across forward steps.
    """
    eye = jnp.eye(num_species, dtype=node_params["w1"].dtype)
    return _mlp_ln_ref(eye, node_params)


def encoder_forward(z, edge_attr, node_params, edge_params, *,
                    node_table=None, species=None, edge_out_dtype=None):
    """Pallas-backed Encoder.forward.

    z: [N, num_species] STRICTLY one-hot species encoding (as produced by MGN);
    the node path is served from a species table, so soft / multi-hot z would
    diverge from Linear(z).  Pass `species` (int ids, [N]) to skip the argmax,
    and/or a precomputed `node_table` to hoist the table out of the step.
    edge_attr: [E, 3] relative position vectors.
    Returns (h_node [N, node_dim], h_edge [E, edge_dim]).
    """
    if node_table is None:
        node_table = node_embedding_table(node_params, z.shape[-1])
    idx = jnp.argmax(z, axis=-1) if species is None else species
    h_node = jnp.take(node_table, idx, axis=0)

    h_edge = edge_mlp_layernorm(edge_attr, **edge_params, out_dtype=edge_out_dtype)
    return h_node, h_edge


# ----------------------------------------------------------------------------
# Parameter init.
# ----------------------------------------------------------------------------
def init_mlp_ln_params(key, d_in, hidden, d_out, dtype=jnp.float32):
    k1, k2 = jax.random.split(key)
    scale1 = 1.0 / jnp.sqrt(jnp.float32(d_in))
    scale2 = 1.0 / jnp.sqrt(jnp.float32(hidden))
    return {
        "w1": jax.random.normal(k1, (d_in, hidden), dtype) * scale1,
        "b1": jnp.zeros((1, hidden), dtype),
        "w2": jax.random.normal(k2, (hidden, d_out), dtype) * scale2,
        "b2": jnp.zeros((1, d_out), dtype),
        "gamma": jnp.ones((1, d_out), dtype),
        "beta": jnp.zeros((1, d_out), dtype),
    }


if __name__ == "__main__":
    key = jax.random.PRNGKey(0)
    k_species, k_edges, k_node_p, k_edge_p = jax.random.split(key, 4)

    # Small synthetic graph
    num_nodes = 64
    num_edges = 96
    num_species = 4
    node_dim = 32
    edge_dim = 32

    # z: one-hot species per node; edge_attr: relative position vectors [E, 3]
    species = jax.random.randint(k_species, (num_nodes,), 0, num_species)
    z = jax.nn.one_hot(species, num_species, dtype=jnp.float32)
    edge_attr = jax.random.normal(k_edges, (num_edges, 3), jnp.float32)

    node_params = init_mlp_ln_params(k_node_p, num_species, node_dim, node_dim)
    edge_params = init_mlp_ln_params(k_edge_p, 3 + 1, edge_dim, edge_dim)

    # Hoist the tiny species table out of the per-step forward (params-only).
    table = node_embedding_table(node_params, num_species)

    fwd = jax.jit(functools.partial(
        encoder_forward,
        node_params=node_params, edge_params=edge_params, node_table=table))
    h_node, h_edge = fwd(z, edge_attr)
    jax.block_until_ready((h_node, h_edge))

    # Sanity check against a pure-JAX reference of the original module.
    ref_node = _mlp_ln_ref(z, node_params)
    e_norm = jnp.linalg.norm(edge_attr, axis=-1, keepdims=True)
    ref_edge = _mlp_ln_ref(
        jnp.concatenate([edge_attr, e_norm], axis=-1), edge_params)

    assert h_node.shape == (num_nodes, node_dim)
    assert h_edge.shape == (num_edges, edge_dim)
    assert jnp.allclose(h_node, ref_node, atol=1e-4, rtol=1e-4)
    assert jnp.allclose(h_edge, ref_edge, atol=1e-4, rtol=1e-4)

    print("KERNEL_OK")
</pallas_src>

<mosaic_0001>
module attributes {stable_mosaic.version = 11 : i64} {
  func.func @_edge_mlp_ln_kernel(%arg0: i32, %arg1: memref<48x3xf32, #tpu.memory_space<vmem>>, %arg2: memref<4x32xf32, #tpu.memory_space<vmem>>, %arg3: memref<1x32xf32, #tpu.memory_space<vmem>>, %arg4: memref<32x32xf32, #tpu.memory_space<vmem>>, %arg5: memref<1x32xf32, #tpu.memory_space<vmem>>, %arg6: memref<1x32xf32, #tpu.memory_space<vmem>>, %arg7: memref<1x32xf32, #tpu.memory_space<vmem>>, %arg8: memref<48x32xf32, #tpu.memory_space<vmem>>) attributes {dimension_semantics = [#tpu.dimension_semantics<parallel>], iteration_bounds = array<i64: 2>, scalar_prefetch = 0 : i64, scratch_operands = 0 : i64, tpu.core_type = #tpu.core_type<tc>, window_params = [{transform_indices = @transform_0, window_bounds = array<i64: 48, 3>}, {pipeline_mode = #tpu.pipeline_mode<synchronous>, transform_indices = @transform_1, window_bounds = array<i64: 4, 32>}, {pipeline_mode = #tpu.pipeline_mode<synchronous>, transform_indices = @transform_2, window_bounds = array<i64: 1, 32>}, {pipeline_mode = #tpu.pipeline_mode<synchronous>, transform_indices = @transform_3, window_bounds = array<i64: 32, 32>}, {pipeline_mode = #tpu.pipeline_mode<synchronous>, transform_indices = @transform_4, window_bounds = array<i64: 1, 32>}, {pipeline_mode = #tpu.pipeline_mode<synchronous>, transform_indices = @transform_5, window_bounds = array<i64: 1, 32>}, {pipeline_mode = #tpu.pipeline_mode<synchronous>, transform_indices = @transform_6, window_bounds = array<i64: 1, 32>}, {transform_indices = @transform_7, window_bounds = array<i64: 48, 32>}]} {
    %c0 = arith.constant 0 : index
    %c0_0 = arith.constant 0 : index
    %0 = vector.load %arg1[%c0, %c0_0] : memref<48x3xf32, #tpu.memory_space<vmem>>, vector<48x3xf32>
    %1 = vector.extract_strided_slice %0 {offsets = [0, 0], sizes = [48, 1], strides = [1, 1]} : vector<48x3xf32> to vector<48x1xf32>
    %2 = vector.extract_strided_slice %0 {offsets = [0, 1], sizes = [48, 1], strides = [1, 1]} : vector<48x3xf32> to vector<48x1xf32>
    %3 = vector.extract_strided_slice %0 {offsets = [0, 2], sizes = [48, 1], strides = [1, 1]} : vector<48x3xf32> to vector<48x1xf32>
    %4 = arith.mulf %1, %1 : vector<48x1xf32>
    %5 = arith.mulf %2, %2 : vector<48x1xf32>
    %6 = arith.addf %4, %5 : vector<48x1xf32>
    %7 = arith.mulf %3, %3 : vector<48x1xf32>
    %8 = arith.addf %6, %7 : vector<48x1xf32>
    %9 = math.sqrt %8 : vector<48x1xf32>
    %c0_1 = arith.constant 0 : index
    %c0_2 = arith.constant 0 : index
    %10 = vector.load %arg2[%c0_1, %c0_2] : memref<4x32xf32, #tpu.memory_space<vmem>>, vector<4x32xf32>
    %c0_3 = arith.constant 0 : index
    %c0_4 = arith.constant 0 : index
    %11 = vector.load %arg3[%c0_3, %c0_4] : memref<1x32xf32, #tpu.memory_space<vmem>>, vector<1x32xf32>
    %12 = vector.extract_strided_slice %10 {offsets = [0, 0], sizes = [1, 32], strides = [1, 1]} : vector<4x32xf32> to vector<1x32xf32>
    %13 = vector.broadcast %1 : vector<48x1xf32> to vector<48x32xf32>
    %14 = vector.broadcast %12 : vector<1x32xf32> to vector<48x32xf32>
    %15 = arith.mulf %13, %14 : vector<48x32xf32>
    %16 = vector.broadcast %11 : vector<1x32xf32> to vector<48x32xf32>
    %17 = arith.addf %16, %15 : vector<48x32xf32>
    %18 = vector.extract_strided_slice %10 {offsets = [1, 0], sizes = [1, 32], strides = [1, 1]} : vector<4x32xf32> to vector<1x32xf32>
    %19 = vector.broadcast %2 : vector<48x1xf32> to vector<48x32xf32>
    %20 = vector.broadcast %18 : vector<1x32xf32> to vector<48x32xf32>
    %21 = arith.mulf %19, %20 : vector<48x32xf32>
    %22 = arith.addf %17, %21 : vector<48x32xf32>
    %23 = vector.extract_strided_slice %10 {offsets = [2, 0], sizes = [1, 32], strides = [1, 1]} : vector<4x32xf32> to vector<1x32xf32>
    %24 = vector.broadcast %3 : vector<48x1xf32> to vector<48x32xf32>
    %25 = vector.broadcast %23 : vector<1x32xf32> to vector<48x32xf32>
    %26 = arith.mulf %24, %25 : vector<48x32xf32>
    %27 = arith.addf %22, %26 : vector<48x32xf32>
    %28 = vector.extract_strided_slice %10 {offsets = [3, 0], sizes = [1, 32], strides = [1, 1]} : vector<4x32xf32> to vector<1x32xf32>
    %29 = vector.broadcast %9 : vector<48x1xf32> to vector<48x32xf32>
    %30 = vector.broadcast %28 : vector<1x32xf32> to vector<48x32xf32>
    %31 = arith.mulf %29, %30 : vector<48x32xf32>
    %32 = arith.addf %27, %31 : vector<48x32xf32>
    %33 = arith.negf %32 : vector<48x32xf32>
    %34 = math.exp %33 : vector<48x32xf32>
    %cst = arith.constant 1.000000e+00 : f32
    %35 = vector.broadcast %cst : f32 to vector<48x32xf32>
    %36 = arith.addf %35, %34 : vector<48x32xf32>
    %37 = arith.divf %35, %36 : vector<48x32xf32>
    %38 = arith.mulf %32, %37 : vector<48x32xf32>
    %c0_5 = arith.constant 0 : index
    %c0_6 = arith.constant 0 : index
    %39 = vector.load %arg4[%c0_5, %c0_6] : memref<32x32xf32, #tpu.memory_space<vmem>>, vector<32x32xf32>
    %cst_7 = arith.constant dense<0.000000e+00> : vector<48x32xf32>
    %40 = tpu.matmul %38, %39, %cst_7 {dimension_numbers = #tpu.dot_dimension_numbers<[1], [0], [0], [1], [0, 0, 1, 1], [], []>} : vector<48x32xf32>, vector<32x32xf32>, vector<48x32xf32> -> vector<48x32xf32>
    %c0_8 = arith.constant 0 : index
    %c0_9 = arith.constant 0 : index
    %41 = vector.load %arg5[%c0_8, %c0_9] : memref<1x32xf32, #tpu.memory_space<vmem>>, vector<1x32xf32>
    %42 = vector.broadcast %41 : vector<1x32xf32> to vector<48x32xf32>
    %43 = arith.addf %40, %42 : vector<48x32xf32>
    %cst_10 = arith.constant dense<0.000000e+00> : vector<48xf32>
    %44 = vector.multi_reduction <add>, %43, %cst_10 [1] : vector<48x32xf32> to vector<48xf32>
    %45 = vector.shape_cast %44 : vector<48xf32> to vector<48x1xf32>
    %cst_11 = arith.constant 3.200000e+01 : f32
    %46 = vector.broadcast %cst_11 : f32 to vector<48x1xf32>
    %47 = arith.divf %45, %46 : vector<48x1xf32>
    %48 = vector.broadcast %47 : vector<48x1xf32> to vector<48x32xf32>
    %49 = arith.subf %43, %48 : vector<48x32xf32>
    %50 = arith.mulf %49, %49 : vector<48x32xf32>
    %cst_12 = arith.constant dense<0.000000e+00> : vector<48xf32>
    %51 = vector.multi_reduction <add>, %50, %cst_12 [1] : vector<48x32xf32> to vector<48xf32>
    %52 = vector.shape_cast %51 : vector<48xf32> to vector<48x1xf32>
    %cst_13 = arith.constant 3.200000e+01 : f32
    %53 = vector.broadcast %cst_13 : f32 to vector<48x1xf32>
    %54 = arith.divf %52, %53 : vector<48x1xf32>
    %55 = vector.broadcast %47 : vector<48x1xf32> to vector<48x32xf32>
    %56 = arith.subf %43, %55 : vector<48x32xf32>
    %cst_14 = arith.constant 9.99999974E-6 : f32
    %57 = vector.broadcast %cst_14 : f32 to vector<48x1xf32>
    %58 = arith.addf %54, %57 : vector<48x1xf32>
    %59 = math.rsqrt %58 : vector<48x1xf32>
    %60 = vector.broadcast %59 : vector<48x1xf32> to vector<48x32xf32>
    %61 = arith.mulf %56, %60 : vector<48x32xf32>
    %c0_15 = arith.constant 0 : index
    %c0_16 = arith.constant 0 : index
    %62 = vector.load %arg6[%c0_15, %c0_16] : memref<1x32xf32, #tpu.memory_space<vmem>>, vector<1x32xf32>
    %63 = vector.broadcast %62 : vector<1x32xf32> to vector<48x32xf32>
    %64 = arith.mulf %61, %63 : vector<48x32xf32>
    %c0_17 = arith.constant 0 : index
    %c0_18 = arith.constant 0 : index
    %65 = vector.load %arg7[%c0_17, %c0_18] : memref<1x32xf32, #tpu.memory_space<vmem>>, vector<1x32xf32>
    %66 = vector.broadcast %65 : vector<1x32xf32> to vector<48x32xf32>
    %67 = arith.addf %64, %66 : vector<48x32xf32>
    %c0_19 = arith.constant 0 : index
    %c0_20 = arith.constant 0 : index
    %68 = vector.load %arg8[%c0_19, %c0_20] : memref<48x32xf32, #tpu.memory_space<vmem>>, vector<48x32xf32>
    tpu.vector_store %arg8[%c0_19, %c0_20], %67 {strides = array<i32>} : memref<48x32xf32, #tpu.memory_space<vmem>>, vector<48x32xf32>,
    return
  }
  func.func @transform_0(%arg0: i32) -> (i32, i32) {
    %c0_i32 = arith.constant 0 : i32
    %c0_i32_0 = arith.constant 0 : i32
    return %arg0, %c0_i32 : i32, i32
  }
  func.func @transform_1(%arg0: i32) -> (i32, i32) {
    %c0_i32 = arith.constant 0 : i32
    %c0_i32_0 = arith.constant 0 : i32
    %c0_i32_1 = arith.constant 0 : i32
    return %c0_i32, %c0_i32_0 : i32, i32
  }
  func.func @transform_2(%arg0: i32) -> (i32, i32) {
    %c0_i32 = arith.constant 0 : i32
    %c0_i32_0 = arith.constant 0 : i32
    %c0_i32_1 = arith.constant 0 : i32
    return %c0_i32, %c0_i32_0 : i32, i32
  }
  func.func @transform_3(%arg0: i32) -> (i32, i32) {
    %c0_i32 = arith.constant 0 : i32
    %c0_i32_0 = arith.constant 0 : i32
    %c0_i32_1 = arith.constant 0 : i32
    return %c0_i32, %c0_i32_0 : i32, i32
  }
  func.func @transform_4(%arg0: i32) -> (i32, i32) {
    %c0_i32 = arith.constant 0 : i32
    %c0_i32_0 = arith.constant 0 : i32
    %c0_i32_1 = arith.constant 0 : i32
    return %c0_i32, %c0_i32_0 : i32, i32
  }
  func.func @transform_5(%arg0: i32) -> (i32, i32) {
    %c0_i32 = arith.constant 0 : i32
    %c0_i32_0 = arith.constant 0 : i32
    %c0_i32_1 = arith.constant 0 : i32
    return %c0_i32, %c0_i32_0 : i32, i32
  }
  func.func @transform_6(%arg0: i32) -> (i32, i32) {
    %c0_i32 = arith.constant 0 : i32
    %c0_i32_0 = arith.constant 0 : i32
    %c0_i32_1 = arith.constant 0 : i32
    return %c0_i32, %c0_i32_0 : i32, i32
  }
  func.func @transform_7(%arg0: i32) -> (i32, i32) {
    %c0_i32 = arith.constant 0 : i32
    %c0_i32_0 = arith.constant 0 : i32
    return %arg0, %c0_i32 : i32, i32
  }
}

</mosaic_0001>

<bundles_post_ra>
// kernel: encoder_forward.1
= control target key start
LH: loop header
LB: loop body
LE: loop exit
PB: predicated region body
PF: predicated region fallthrough
CT: control target
= control target key end

     0   :  { %s1092_s24 = smov 0   ;;  %s1194_s0 = inlined_call_operand.vmem [shape: f32[96,3], index: 0, kind: input, shape index: {}]   ;;  %s1195_s1 = inlined_call_operand.vmem [shape: f32[4,32], index: 1, kind: input, shape index: {}]   ;;  %s1196_s2 = inlined_call_operand.vmem [shape: f32[1,32], index: 2, kind: input, shape index: {}, may-alias: {2,4,6}]   ;;  %s1197_s3 = inlined_call_operand.vmem [shape: f32[32,32], index: 3, kind: input, shape index: {}]   ;;  %s1198_s4 = inlined_call_operand.vmem [shape: f32[1,32], index: 4, kind: input, shape index: {}, may-alias: {2,4,6}]   ;;  %s1199_s5 = inlined_call_operand.vmem [shape: f32[1,32], index: 5, kind: input, shape index: {}]   ;;  %s1200_s6 = inlined_call_operand.vmem [shape: f32[1,32], index: 6, kind: input, shape index: {}, may-alias: {2,4,6}]   ;;  %s1201_s7 = inlined_call_operand.vmem [shape: f32[96,32], index: 7, kind: output, shape index: {}]  }
   0x1 LB: > { %s904_s25 = sadd.s32 4294967295, %s1045_s24   ;;  %p908_p0 = scmp.ge.s32.totalorder %s1045_s24, 1  ;;  %s1045_s24 = sphi %s1092_s24, %s17_s24  }
   0x2   : > { %p238_p1 = scmp.lt.s32.totalorder %s1045_s24, 3 }
   0x4   : > { %p239_p2 = pnand %p908_p0, %p238_p1 }
   0x5   : > { %s270_s26 = smul.u32 (!%p239_p2), 6, %s904_s25  ;;  %v1047_v0 = vmov (!%p239_p2), 0   ;;  %s1048_s8 = smov (!%p239_p2), 126   ;;  %v1050_v13 = vmov (!%p239_p2), 1   ;;  %v1051_v14 = vmov (!%p239_p2), 2   ;;  %vm623_vm12 = vcmask (!%p239_p2), 261120  }
   0x6   : > { %242 = sbr.rel (%p239_p2) target bundleno = 870 (0x366), region = 48  ;;  %982 = vset.pattern.permute.xlu1 (!%p239_p2), %v1047_v0  ;;  %981 = vset.pattern.permute.xlu0 (!%p239_p2), %v1047_v0  ;;  %s1049_s9 = smov (!%p239_p2), 127  }
   0x7   : > { %p271_p3 = scmp.lt.s32.totalorder (!%p239_p2), %s270_s26, 11 }
   0xd   : > { %s1203_s26 = smov (!%p271_p3, %s270_s26), 11 }
   0xe   : > { %s909_s27 = sshll.u32 %s1203_s26, 3 }
   0xf   : > { %s274_s30 = scalar_lea.vmem %s1194_s0, %s909_s27  ;;  %s280_s10 = scalar_lea.vmem %s1201_s7, %s909_s27 }
  0x10   : > { %v284_v1 = vld [vmem:[%s274_s30 + $0x10] sm:$0xff]  ;;  %v285_v2 = vld [vmem:[%s274_s30 + $0x18] sm:$0xff]  ;;  %v286_v5 = vld [vmem:[%s274_s30 + $0x20] sm:$0xff] }
  0x11   : > { %v290_v3 = vmul.f32 %v284_v1, %v284_v1  ;;  %v291_v4 = vmul.f32 %v285_v2, %v285_v2  ;;  %v282_v6 = vld [vmem:[%s274_s30] sm:$0xff]  ;;  %v292_v7 = vmul.f32 %v286_v5, %v286_v5  ;;  %v287_v9 = vld [vmem:[%s274_s30 + $0x28] sm:$0xff] }
  0x12   : > { %v288_v8 = vmul.f32 %v282_v6, %v282_v6  ;;  %v283_v10 = vld [vmem:[%s274_s30 + $0x8] sm:$0xff]  ;;  %v293_v11 = vmul.f32 %v287_v9, %v287_v9 }
  0x13   : > { %328 = vrot.lane.b32.xlu1 %v290_v3, %s1048_s8  ;;  %304 = vrot.lane.b32.xlu0 %v290_v3, %s1049_s9  ;;  %v1108_v12 = vmul.f32 %v283_v10, %v283_v10 }
  0x17   : > { %330 = vrot.lane.b32.xlu1 %v291_v4, %s1048_s8  ;;  %306 = vrot.lane.b32.xlu0 %v291_v4, %s1049_s9 }
  0x1b   : > { %308 = vrot.lane.b32.xlu1 %v292_v7, %s1049_s9  ;;  %300 = vrot.lane.b32.xlu0 %v288_v8, %s1049_s9 }
  0x1f   : > { %310 = vrot.lane.b32.xlu1 %v293_v11, %s1049_s9  ;;  %302 = vrot.lane.b32.xlu0 %v1108_v12, %s1049_s9 }
  0x23   : > { %332 = vrot.lane.b32.xlu1 %v292_v7, %s1048_s8  ;;  %324 = vrot.lane.b32.xlu0 %v288_v8, %s1048_s8 }
  0x27   : > { %334 = vrot.lane.b32.xlu1 %v293_v11, %s1048_s8  ;;  %326 = vrot.lane.b32.xlu0 %v1108_v12, %s1048_s8 }
  0x2b   : > { %409 = vperm.xlu1 %982, %v285_v2   ;;  %404 = vperm.xlu0 %981, %v284_v1  }
  0x2f   : > { %983 = vset.pattern.permute.xlu1 %v1050_v13  ;;  %984 = vset.pattern.permute.xlu0 %v1050_v13 }
  0x30   : > { %453 = vperm.xlu1 %983, %v284_v1   ;;  %457 = vperm.xlu0 %984, %v285_v2  }
  0x34   : > { %985 = vset.pattern.permute.xlu1 %v1047_v0  ;;  %461 = vperm.xlu0 %984, %v286_v5  }
  0x35   : > { %394 = vperm.xlu1 %985, %v282_v6  }
  0x38   : > { %465 = vperm.xlu0 %984, %v287_v9  }
  0x39   : > { %414 = vperm.xlu1 %985, %v286_v5  }
  0x3c   : > { %987 = vset.pattern.permute.xlu0 %v1051_v14 }
  0x3d   : > { %399 = vperm.xlu1 %985, %v283_v10   ;;  %493 = vperm.xlu0 %987, %v284_v1  }
  0x41   : > { %419 = vperm.xlu1 %985, %v287_v9   ;;  %497 = vperm.xlu0 %987, %v285_v2  }
  0x45   : > { %986 = vset.pattern.permute.xlu1 %v1050_v13  ;;  %485 = vperm.xlu0 %987, %v282_v6  }
  0x46   : > { %445 = vperm.xlu1 %986, %v282_v6   ;;  %v613_v6 = vld [vmem:[%s1197_s3 + $0x8] sm:$0xff] }
  0x49   : > { %505 = vperm.xlu0 %987, %v287_v9   ;;  %v615_v9 = vld [vmem:[%s1197_s3 + $0x18] sm:$0xff] }
  0x4a   : > { %449 = vperm.xlu1 %986, %v283_v10  }
  0x4d   : > { %990 = vset.pattern.permute.xlu0 %v1047_v0 }
  0x4e   : > { %988 = vset.pattern.permute.xlu1 %v1051_v14 }
  0x4f   : > { %501 = vperm.xlu1 %988, %v286_v5   ;;  %v612_v5 = vld [vmem:[%s1197_s3] sm:$0xff] }
  0x53   : > { %489 = vperm.xlu1 %988, %v283_v10  }
  0x57   : > { %989 = vset.pattern.permute.xlu1 %v1047_v0 }
  0x85   : > { %v329_v15 = vpop.permute.xlu1 %328  ;;  %v305_v16 = vpop.permute.xlu0 %304 }
  0x86   : > { %v320_v17 = vadd.f32 %v305_v16, %v290_v3 }
  0x88   : > { %v344_v18 = vadd.f32 %v329_v15, %v320_v17 }
  0x89   : > { %v331_v19 = vpop.permute.xlu1 %330  ;;  %v307_v20 = vpop.permute.xlu0 %306 }
  0x8a   : > { %v321_v21 = vadd.f32 %v307_v20, %v291_v4  ;;  %991 = vrsqrt.f32 %v344_v18  ;;  %vm364_vm0 = vcmp.eq.f32.partialorder %v344_v18, inf  ;;  %v367_v36 = vand.u32 2147483648, %v344_v18 }
  0x8b   : > { %vm366_vm1 = vcmp.eq.f32.partialorder %v344_v18, 0.0 }
  0x8c   : > { %v345_v22 = vadd.f32 %v331_v19, %v321_v21  ;;  %v422_v19 = vlaneseq }
  0x8d   : > { %v309_v23 = vpop.permute.xlu1 %308  ;;  %v301_v24 = vpop.permute.xlu0 %300 }
  0x8e   : > { %993 = vrsqrt.f32 %v345_v22  ;;  %v322_v27 = vadd.f32 %v309_v23, %v292_v7  ;;  %v318_v29 = vadd.f32 %v301_v24, %v288_v8  ;;  %vm371_vm2 = vcmp.eq.f32.partialorder %v345_v22, inf  ;;  %v614_v8 = vld [vmem:[%s1197_s3 + $0x10] sm:$0xff]  ;;  %v390_v24 = vld [vmem:[%s1195_s1] sm:$0xf] }
  0x8f   : > { %v374_v46 = vand.u32 2147483648, %v345_v22  ;;  %vm373_vm3 = vcmp.eq.f32.partialorder %v345_v22, 0.0  ;;  %v956_v7 = vpack.c.bf16 %v613_v6, %v612_v5  ;;  %v960_v10 = vpack.c.bf16 %v615_v9, %v614_v8 }
  0x90   : > { %v423_v21 = vshrl.u32 %v422_v19, 7 }
  0x91   : > { %v311_v25 = vpop.permute.xlu1 %310  ;;  %v303_v26 = vpop.permute.xlu0 %302  ;;  %964 = vmatprep.subr.bf16.mxu1 %v956_v7  ;;  %957 = vmatprep.subr.bf16.mxu0 %v956_v7 }
  0x92   : > { %v323_v33 = vadd.f32 %v311_v25, %v293_v11  ;;  %v319_v39 = vadd.f32 %v303_v26, %v1108_v12  ;;  %966 = vmatpush3.bf16.msra.mxu1 %v956_v7  ;;  %959 = vmatpush3.bf16.msra.mxu0 %v956_v7  ;;  %v424_v23 = vsub.s32 0, %v423_v21 }
  0x93   : > { %965 = vmatprep.subr.bf16.mxu1 %v960_v10  ;;  %961 = vmatprep.subr.bf16.mxu0 %v960_v10 }
  0x94   : > { %v992_v28 = vpop.eup %991 }
  0x95   : > { %v333_v30 = vpop.permute.xlu1 %332  ;;  %v325_v31 = vpop.permute.xlu0 %324  ;;  %v363_v32 = vmul.f32 %v992_v28, %v344_v18  ;;  %v470_v28 = vsub.s32 1, %v423_v21 }
  0x96   : > { %v346_v34 = vadd.f32 %v333_v30, %v322_v27  ;;  %v342_v35 = vadd.f32 %v325_v31, %v318_v29  ;;  %967 = vmatpush3.bf16.msra.mxu1 %v960_v10  ;;  %963 = vmatpush3.bf16.msra.mxu0 %v960_v10  ;;  %v425_v27 = vrot.slane %v390_v24, %v424_v23 }
  0x97   : > { %v365_v37 = vsel %vm364_vm0, %v344_v18, %v363_v32  ;;  %v471_v31 = vrot.slane %v390_v24, %v470_v28  ;;  %v510_v32 = vsub.s32 2, %v423_v21 }
  0x98   : > { %v994_v38 = vpop.eup %993  ;;  %995 = vrsqrt.f32 %v346_v34  ;;  %v368_v40 = vsel %vm366_vm1, %v367_v36, %v365_v37  ;;  %vm378_vm4 = vcmp.eq.f32.partialorder %v346_v34, inf  ;;  %v381_v52 = vand.u32 2147483648, %v346_v34 }
  0x99   : > { %997 = vrsqrt.f32 %v342_v35  ;;  %v335_v41 = vpop.permute.xlu1 %334  ;;  %536 = vperm.xlu1 %989, %v368_v40   ;;  %v327_v42 = vpop.permute.xlu0 %326  ;;  %v370_v43 = vmul.f32 %v994_v38, %v345_v22  ;;  %vm380_vm5 = vcmp.eq.f32.partialorder %v346_v34, 0.0  ;;  %vm350_vm6 = vcmp.eq.f32.partialorder %v342_v35, inf }
  0x9a   : > { %v347_v44 = vadd.f32 %v335_v41, %v323_v33  ;;  %v343_v45 = vadd.f32 %v327_v42, %v319_v39  ;;  %v353_v55 = vand.u32 2147483648, %v342_v35  ;;  %vm352_vm7 = vcmp.eq.f32.partialorder %v342_v35, 0.0  ;;  %v911_v33 = vld [vmem:[%s1196_s2] ss:$0 sm:$0xff] }
  0x9b   : > { %v372_v47 = vsel %vm371_vm2, %v345_v22, %v370_v43  ;;  %v511_v39 = vrot.slane %v390_v24, %v510_v32 }
  0x9c   : > { %999 = vrsqrt.f32 %v347_v44  ;;  %v375_v48 = vsel %vm373_vm3, %v374_v46, %v372_v47  ;;  %vm357_vm8 = vcmp.eq.f32.partialorder %v343_v45, inf  ;;  %v360_v63 = vand.u32 2147483648, %v343_v45 }
  0x9d   : > { %1001 = vrsqrt.f32 %v343_v45  ;;  %541 = vperm.xlu1 %989, %v375_v48   ;;  %vm359_vm9 = vcmp.eq.f32.partialorder %v343_v45, 0.0  ;;  %vm385_vm10 = vcmp.eq.f32.partialorder %v347_v44, inf  ;;  %v388_v3 = vand.u32 2147483648, %v347_v44 }
  0x9e   : > { %vm387_vm11 = vcmp.eq.f32.partialorder %v347_v44, 0.0 }
  0xa2   : > { %v996_v49 = vpop.eup %995 }
  0xa3   : > { %v998_v50 = vpop.eup %997  ;;  %v377_v51 = vmul.f32 %v996_v49, %v346_v34 }
  0xa4   : > { %v349_v53 = vmul.f32 %v998_v50, %v342_v35 }
  0xa5   : > { %v379_v54 = vsel %vm378_vm4, %v346_v34, %v377_v51 }
  0xa6   : > { %v1000_v56 = vpop.eup %999  ;;  %v382_v57 = vsel %vm380_vm5, %v381_v52, %v379_v54  ;;  %v351_v58 = vsel %vm350_vm6, %v342_v35, %v349_v53  ;;  %v556_v35 = vsub.s32 3, %v423_v21 }
  0xa7   : > { %v1002_v59 = vpop.eup %1001  ;;  %546 = vperm.xlu0 %990, %v382_v57   ;;  %v354_v60 = vsel %vm352_vm7, %v353_v55, %v351_v58  ;;  %v384_v62 = vmul.f32 %v1000_v56, %v347_v44 }
  0xa8   : > { %526 = vperm.xlu1 %989, %v354_v60   ;;  %v356_v61 = vmul.f32 %v1002_v59, %v343_v45  ;;  %v1131_v41 = vrot.slane %v390_v24, %v556_v35 }
  0xa9   : > { %v386_v2 = vsel %vm385_vm10, %v347_v44, %v384_v62 }
  0xaa   : > { %v358_v0 = vsel %vm357_vm8, %v343_v45, %v356_v61  ;;  %v389_v4 = vsel %vm387_vm11, %v388_v3, %v386_v2  ;;  %v410_v11 = vpop.permute.xlu1 %409  ;;  %v405_v16 = vpop.permute.xlu0 %404 }
  0xab   : > { %v361_v1 = vsel %vm359_vm9, %v360_v63, %v358_v0  ;;  %v428_v29 = vmul.f32 %v425_v27, %v405_v16  ;;  %v429_v36 = vmul.f32 %v425_v27, %v410_v11 }
  0xac   : > { %531 = vperm.xlu1 %989, %v361_v1  }
  0xad   : > { %v440_v38 = vadd.f32 %v911_v33, %v428_v29  ;;  %v441_v42 = vadd.f32 %v911_v33, %v429_v36 }
  0xaf   : > { %v454_v12 = vpop.permute.xlu1 %453  ;;  %v458_v18 = vpop.permute.xlu0 %457 }
  0xb0   : > { %551 = vperm.xlu1 %989, %v389_v4   ;;  %v474_v37 = vmul.f32 %v471_v31, %v454_v12  ;;  %v475_v43 = vmul.f32 %v471_v31, %v458_v18 }
  0xb2   : > { %v480_v44 = vadd.f32 %v474_v37, %v440_v38  ;;  %v481_v48 = vadd.f32 %v475_v43, %v441_v42 }
  0xb3   : > { %v462_v22 = vpop.permute.xlu0 %461 }
  0xb4   : > { %v395_v13 = vpop.permute.xlu1 %394  ;;  %v476_v61 = vmul.f32 %v471_v31, %v462_v22 }
  0xb5   : > { %v426_v54 = vmul.f32 %v425_v27, %v395_v13 }
  0xb7   : > { %v466_v26 = vpop.permute.xlu0 %465  ;;  %v438_v63 = vadd.f32 %v911_v33, %v426_v54 }
  0xb8   : > { %v415_v14 = vpop.permute.xlu1 %414  ;;  %v477_v12 = vmul.f32 %v471_v31, %v466_v26 }
  0xb9   : > { %v430_v52 = vmul.f32 %v425_v27, %v415_v14 }
  0xbb   : > { %v442_v60 = vadd.f32 %v911_v33, %v430_v52 }
  0xbc   : > { %v400_v15 = vpop.permute.xlu1 %399  ;;  %v494_v34 = vpop.permute.xlu0 %493 }
  0xbd   : > { %v514_v45 = vmul.f32 %v511_v39, %v494_v34  ;;  %v427_v0 = vmul.f32 %v425_v27, %v400_v15  ;;  %v482_v4 = vadd.f32 %v476_v61, %v442_v60  ;;  %v918_v61 = vld [vmem:[%s1198_s4] ss:$0 sm:$0xff] }
  0xbf   : > { %v520_v49 = vadd.f32 %v514_v45, %v480_v44  ;;  %v439_v7 = vadd.f32 %v911_v33, %v427_v0 }
  0xc0   : > { %v420_v17 = vpop.permute.xlu1 %419  ;;  %v498_v46 = vpop.permute.xlu0 %497 }
  0xc1   : > { %v515_v50 = vmul.f32 %v511_v39, %v498_v46  ;;  %v431_v5 = vmul.f32 %v425_v27, %v420_v17 }
  0xc3   : > { %v521_v57 = vadd.f32 %v515_v50, %v481_v48  ;;  %v443_v13 = vadd.f32 %v911_v33, %v431_v5 }
  0xc4   : > { %v486_v55 = vpop.permute.xlu0 %485 }
  0xc5   : > { %v446_v20 = vpop.permute.xlu1 %445  ;;  %v512_v10 = vmul.f32 %v511_v39, %v486_v55  ;;  %v483_v27 = vadd.f32 %v477_v12, %v443_v13 }
  0xc6   : > { %v472_v1 = vmul.f32 %v471_v31, %v446_v20 }
  0xc8   : > { %v506_v3 = vpop.permute.xlu0 %505  ;;  %v478_v8 = vadd.f32 %v472_v1, %v438_v63 }
  0xc9   : > { %v450_v25 = vpop.permute.xlu1 %449  ;;  %v517_v28 = vmul.f32 %v511_v39, %v506_v3 }
  0xca   : > { %v473_v9 = vmul.f32 %v471_v31, %v450_v25  ;;  %v518_v15 = vadd.f32 %v512_v10, %v478_v8 }
  0xcb   : > { %v523_v36 = vadd.f32 %v517_v28, %v483_v27 }
  0xcc   : > { %v479_v19 = vadd.f32 %v473_v9, %v439_v7 }
  0xce   : > { %v502_v30 = vpop.permute.xlu1 %501 }
  0xcf   : > { %v516_v6 = vmul.f32 %v511_v39, %v502_v30 }
  0xd1   : > { %v522_v14 = vadd.f32 %v516_v6, %v482_v4 }
  0xd2   : > { %v490_v40 = vpop.permute.xlu1 %489 }
  0xd3   : > { %v513_v20 = vmul.f32 %v511_v39, %v490_v40 }
  0xd5   : > { %v519_v30 = vadd.f32 %v513_v20, %v479_v19 }
 0x118   : > { %v537_v47 = vpop.permute.xlu1 %536 }
 0x119   : > { %v560_v51 = vmul.f32 %v1131_v41, %v537_v47 }
 0x11b   : > { %v1134_v53 = vadd.f32 %v560_v51, %v520_v49 }
 0x11c   : > { %v542_v56 = vpop.permute.xlu1 %541 }
 0x11d   : > { %v914_v58 = vmul.f32 -1.442695, %v1134_v53  ;;  %v561_v59 = vmul.f32 %v1131_v41, %v542_v56 }
 0x11f   : > { %1003 = vpow2.f32 %v914_v58  ;;  %v567_v62 = vadd.f32 %v561_v59, %v521_v57 }
 0x121   : > { %v915_v2 = vmul.f32 -1.442695, %v567_v62 }
 0x123   : > { %1005 = vpow2.f32 %v915_v2 }
 0x126   : > { %v547_v11 = vpop.permute.xlu0 %546 }
 0x127   : > { %v527_v16 = vpop.permute.xlu1 %526  ;;  %v562_v18 = vmul.f32 %v1131_v41, %v547_v11 }
 0x128   : > { %v558_v21 = vmul.f32 %v1131_v41, %v527_v16 }
 0x129   : > { %v1004_v22 = vpop.eup %1003  ;;  %v568_v17 = vadd.f32 %v562_v18, %v522_v14 }
 0x12a   : > { %v590_v23 = vadd.f32 1.0, %v1004_v22  ;;  %v564_v24 = vadd.f32 %v558_v21, %v518_v15 }
 0x12b   : > { %v916_v25 = vmul.f32 -1.442695, %v568_v17  ;;  %v532_v29 = vpop.permute.xlu1 %531 }
 0x12c   : > { %1007 = vrcp.f32 %v590_v23  ;;  %v912_v26 = vmul.f32 -1.442695, %v564_v24  ;;  %v559_v31 = vmul.f32 %v1131_v41, %v532_v29 }
 0x12d   : > { %v1006_v32 = vpop.eup %1005  ;;  %1009 = vpow2.f32 %v916_v25 }
 0x12e   : > { %v591_v33 = vadd.f32 1.0, %v1006_v32  ;;  %1011 = vpow2.f32 %v912_v26  ;;  %v565_v34 = vadd.f32 %v559_v31, %v519_v30 }
 0x12f   : > { %v552_v35 = vpop.permute.xlu1 %551 }
 0x130   : > { %1013 = vrcp.f32 %v591_v33  ;;  %v913_v37 = vmul.f32 -1.442695, %v565_v34  ;;  %v563_v38 = vmul.f32 %v1131_v41, %v552_v35 }
 0x132   : > { %1015 = vpow2.f32 %v913_v37  ;;  %v569_v39 = vadd.f32 %v563_v38, %v523_v36 }
 0x134   : > { %v917_v40 = vmul.f32 -1.442695, %v569_v39 }
 0x136   : > { %v1008_v42 = vpop.eup %1007  ;;  %1017 = vpow2.f32 %v917_v40 }
 0x137   : > { %v1010_v43 = vpop.eup %1009  ;;  %v608_v44 = vmul.f32 %v1008_v42, %v1134_v53 }
 0x138   : > { %v1012_v45 = vpop.eup %1011  ;;  %v592_v46 = vadd.f32 1.0, %v1010_v43 }
 0x139   : > { %v588_v47 = vadd.f32 1.0, %v1012_v45  ;;  %950 = vmatprep.mubr.msk.f32.mxu1 %vm623_vm12, %v608_v44 }
 0x13a   : > { %v1014_v48 = vpop.eup %1013  ;;  %1019 = vrcp.f32 %v592_v46 }
 0x13b   : > { %v609_v49 = vmul.f32 %v1014_v48, %v567_v62  ;;  %1021 = vrcp.f32 %v588_v47 }
 0x13c   : > { %v1016_v50 = vpop.eup %1015 }
 0x13d   : > { %v589_v41 = vadd.f32 1.0, %v1016_v50  ;;  %951 = vmatmul.mubr.msk.f32.vlgmr.msra.gmra.mrb[0].mxu1 %vm623_vm12, %v609_v49 }
 0x13f   : > { %1023 = vrcp.f32 %v589_v41 }
 0x140   : > { %v1018_v51 = vpop.eup %1017 }
 0x141   : > { %v593_v52 = vadd.f32 1.0, %v1018_v51 }
 0x143   : > { %1025 = vrcp.f32 %v593_v52 }
 0x144   : > { %v1020_v54 = vpop.eup %1019 }
 0x145   : > { %v1022_v55 = vpop.eup %1021  ;;  %v610_v53 = vmul.f32 %v1020_v54, %v568_v17 }
 0x146   : > { %v606_v56 = vmul.f32 %v1022_v55, %v564_v24 }
 0x147   : > { %953 = vmatprep.mubr.msk.f32.mxu1 %vm623_vm12, %v610_v53 }
 0x148   : > { %947 = vmatprep.mubr.msk.f32.mxu0 %vm623_vm12, %v606_v56 }
 0x149   : > { %v1024_v57 = vpop.eup %1023 }
 0x14a   : > { %v607_v58 = vmul.f32 %v1024_v57, %v565_v34 }
 0x14c   : > { %948 = vmatmul.mubr.msk.f32.vlgmr.msra.gmra.mrb[0].mxu0 %vm623_vm12, %v607_v58 }
 0x14d   : > { %v1026_v59 = vpop.eup %1025 }
 0x14e   : > { %v611_v60 = vmul.f32 %v1026_v59, %v569_v39 }
 0x150   : > { %954 = vmatmul.mubr.msk.f32.gmra.mrb[2].mxu1 %vm623_vm12, %v611_v60 }
 0x210   : > { %v952_v62 = vpop.f32.mrb[0].mxu1 }
 0x211   : > { %v724_v63 = vadd.f32 %v952_v62, %v918_v61  ;;  %v718_v0 = vpop.f32.mrb[1].mxu1 }
 0x212   : > { %v719_v7 = vadd.f32 %v918_v61, %v718_v0 }
 0x213   : > { %v746_v1 = vsel %vm623_vm12, %v724_v63, 0.0 }
 0x214   : > { %747 = vadd.xlane.f32.xlu0 %v746_v1  ;;  %v743_v13 = vsel %vm623_vm12, %v719_v7, 0.0  ;;  %v925_v1 = vld [vmem:[%s1199_s5] ss:$0 sm:$0xff] }
 0x21f   : > { %v949_v2 = vpop.f32.mrb[0].mxu0 }
 0x220   : > { %v714_v3 = vadd.f32 %v949_v2, %v918_v61  ;;  %v708_v4 = vpop.f32.mrb[1].mxu0 }
 0x221   : > { %v709_v5 = vadd.f32 %v918_v61, %v708_v4  ;;  %v926_v4 = vld [vmem:[%s1200_s6] ss:$0 sm:$0xff] }
 0x222   : > { %v740_v6 = vsel %vm623_vm12, %v714_v3, 0.0 }
 0x223   : > { %741 = vadd.xlane.f32.xlu1 %v740_v6  ;;  %v955_v8 = vpop.f32.mrb[2].mxu1  ;;  %v737_v9 = vsel %vm623_vm12, %v709_v5, 0.0 }
 0x224   : > { %738 = vadd.xlane.f32.xlu0 %v737_v9  ;;  %v728_v10 = vpop.f32.mrb[3].mxu1  ;;  %v734_v12 = vadd.f32 %v955_v8, %v918_v61 }
 0x225   : > { %v729_v11 = vadd.f32 %v918_v61, %v728_v10 }
 0x226   : > { %v752_v16 = vsel %vm623_vm12, %v734_v12, 0.0 }
 0x227   : > { %v749_v14 = vsel %vm623_vm12, %v729_v11, 0.0 }
 0x228   : > { %744 = vadd.xlane.f32.xlu0 %v743_v13  ;;  %750 = vadd.xlane.f32.xlu1 %v749_v14 }
 0x22c   : > { %753 = vadd.xlane.f32.xlu0 %v752_v16 }
 0x2a1   : > { %v748_v18 = vpop.xlane.xlu0 %747 }
 0x2a2   : > { %v759_v19 = vmul.f32 0.03125, %v748_v18 }
 0x2a4   : > { %v1158_v17 = vsub.f32 %v724_v63, %v759_v19 }
 0x2a6   : > { %v771_v32 = vmul.f32 %v1158_v17, %v1158_v17 }
 0x2a8   : > { %v783_v39 = vsel %vm623_vm12, %v771_v32, 0.0 }
 0x2b0   : > { %v742_v15 = vpop.xlane.xlu1 %741 }
 0x2b1   : > { %v757_v20 = vmul.f32 0.03125, %v742_v15  ;;  %v739_v21 = vpop.xlane.xlu0 %738 }
 0x2b2   : > { %v756_v22 = vmul.f32 0.03125, %v739_v21 }
 0x2b3   : > { %v763_v23 = vsub.f32 %v714_v3, %v757_v20 }
 0x2b4   : > { %v762_v24 = vsub.f32 %v709_v5, %v756_v22 }
 0x2b5   : > { %v751_v27 = vpop.xlane.xlu1 %750  ;;  %v745_v28 = vpop.xlane.xlu0 %744  ;;  %v769_v25 = vmul.f32 %v763_v23, %v763_v23 }
 0x2b6   : > { %v760_v29 = vmul.f32 0.03125, %v751_v27  ;;  %v758_v30 = vmul.f32 0.03125, %v745_v28  ;;  %v768_v26 = vmul.f32 %v762_v24, %v762_v24 }
 0x2b7   : > { %v777_v31 = vsel %vm623_vm12, %v769_v25, 0.0 }
 0x2b8   : > { %v1163_v33 = vsub.f32 %v729_v11, %v760_v29  ;;  %v764_v34 = vsub.f32 %v719_v7, %v758_v30  ;;  %778 = vadd.xlane.f32.xlu0 %v777_v31  ;;  %v774_v35 = vsel %vm623_vm12, %v768_v26, 0.0 }
 0x2b9   : > { %775 = vadd.xlane.f32.xlu1 %v774_v35  ;;  %v754_v36 = vpop.xlane.xlu0 %753 }
 0x2ba   : > { %v761_v37 = vmul.f32 0.03125, %v754_v36  ;;  %v770_v38 = vmul.f32 %v764_v34, %v764_v34  ;;  %v772_v43 = vmul.f32 %v1163_v33, %v1163_v33 }
 0x2bc   : > { %v767_v40 = vsub.f32 %v734_v12, %v761_v37  ;;  %784 = vadd.xlane.f32.xlu0 %v783_v39  ;;  %v780_v42 = vsel %vm623_vm12, %v770_v38, 0.0  ;;  %v786_v45 = vsel %vm623_vm12, %v772_v43, 0.0 }
 0x2bd   : > { %781 = vadd.xlane.f32.xlu1 %v780_v42 }
 0x2be   : > { %v773_v44 = vmul.f32 %v767_v40, %v767_v40 }
 0x2c0   : > { %v789_v46 = vsel %vm623_vm12, %v773_v44, 0.0 }
 0x2c1   : > { %787 = vadd.xlane.f32.xlu1 %v786_v45  ;;  %790 = vadd.xlane.f32.xlu0 %v789_v46 }
 0x345   : > { %v779_v47 = vpop.xlane.xlu0 %778 }
 0x346   : > { %v793_v48 = vmul.f32 0.03125, %v779_v47  ;;  %v776_v49 = vpop.xlane.xlu1 %775 }
 0x347   : > { %v792_v50 = vmul.f32 0.03125, %v776_v49 }
 0x348   : > { %v799_v41 = vadd.f32 1e-05, %v793_v48 }
 0x349   : > { %v798_v51 = vadd.f32 1e-05, %v792_v50  ;;  %v785_v52 = vpop.xlane.xlu0 %784 }
 0x34a   : > { %1027 = vrsqrt.f32 %v799_v41  ;;  %v795_v54 = vmul.f32 0.03125, %v785_v52  ;;  %v782_v55 = vpop.xlane.xlu1 %781 }
 0x34b   : > { %1029 = vrsqrt.f32 %v798_v51  ;;  %v794_v53 = vmul.f32 0.03125, %v782_v55 }
 0x34c   : > { %v801_v56 = vadd.f32 1e-05, %v795_v54 }
 0x34d   : > { %v800_v57 = vadd.f32 1e-05, %v794_v53 }
 0x34e   : > { %1031 = vrsqrt.f32 %v801_v56  ;;  %v788_v58 = vpop.xlane.xlu1 %787  ;;  %v791_v59 = vpop.xlane.xlu0 %790 }
 0x34f   : > { %1033 = vrsqrt.f32 %v800_v57  ;;  %v796_v60 = vmul.f32 0.03125, %v788_v58  ;;  %v797_v61 = vmul.f32 0.03125, %v791_v59 }
 0x351   : > { %v802_v62 = vadd.f32 1e-05, %v796_v60  ;;  %v803_v63 = vadd.f32 1e-05, %v797_v61 }
 0x353   : > { %1035 = vrsqrt.f32 %v802_v62 }
 0x354   : > { %v1028_v0 = vpop.eup %1027  ;;  %1037 = vrsqrt.f32 %v803_v63 }
 0x355   : > { %v1030_v2 = vpop.eup %1029  ;;  %v811_v3 = vmul.f32 %v1028_v0, %v763_v23 }
 0x356   : > { %v810_v5 = vmul.f32 %v1030_v2, %v762_v24 }
 0x357   : > { %v824_v6 = vmul.f32 %v925_v1, %v811_v3 }
 0x358   : > { %v1032_v7 = vpop.eup %1031  ;;  %v823_v8 = vmul.f32 %v925_v1, %v810_v5 }
 0x359   : > { %v1034_v9 = vpop.eup %1033  ;;  %v837_v10 = vadd.f32 %v926_v4, %v824_v6  ;;  %v813_v11 = vmul.f32 %v1032_v7, %v1158_v17 }
 0x35a   : > { %v836_v12 = vadd.f32 %v926_v4, %v823_v8  ;;  %v812_v13 = vmul.f32 %v1034_v9, %v764_v34 }
 0x35b   : > { %843 = vst.msk [vmem:[%s280_s10 + $0x8] sm:$0xff] %vm623_vm12, %v837_v10  ;;  %v826_v14 = vmul.f32 %v925_v1, %v813_v11 }
 0x35c   : > { %842 = vst.msk [vmem:[%s280_s10] sm:$0xff] %vm623_vm12, %v836_v12  ;;  %v825_v16 = vmul.f32 %v925_v1, %v812_v13 }
 0x35d   : > { %v1036_v18 = vpop.eup %1035  ;;  %v839_v19 = vadd.f32 %v926_v4, %v826_v14 }
 0x35e   : > { %v1038_v15 = vpop.eup %1037  ;;  %v838_v20 = vadd.f32 %v926_v4, %v825_v16  ;;  %v814_v21 = vmul.f32 %v1036_v18, %v1163_v33 }
 0x35f   : > { %845 = vst.msk [vmem:[%s280_s10 + $0x18] sm:$0xff] %vm623_vm12, %v839_v19  ;;  %v815_v22 = vmul.f32 %v1038_v15, %v767_v40 }
 0x360   : > { %844 = vst.msk [vmem:[%s280_s10 + $0x10] sm:$0xff] %vm623_vm12, %v838_v20  ;;  %v827_v17 = vmul.f32 %v925_v1, %v814_v21 }
 0x361   : > { %v828_v23 = vmul.f32 %v925_v1, %v815_v22 }
 0x362   : > { %v840_v24 = vadd.f32 %v926_v4, %v827_v17 }
 0x363   : > { %v841_v27 = vadd.f32 %v926_v4, %v828_v23 }
 0x364   : > { %846 = vst.msk [vmem:[%s280_s10 + $0x20] sm:$0xff] %vm623_vm12, %v840_v24 }
 0x365   : > { %847 = vst.msk [vmem:[%s280_s10 + $0x28] sm:$0xff] %vm623_vm12, %v841_v27 }
 0x366 PF: > { %s17_s24 = sadd.s32 1, %s1045_s24  }
 0x367   : > { %p14_p4 = scmp.ge.s32.totalorder %s17_s24, 4  }
 0x369   :  { %16 = sbr.rel (!%p14_p4) target bundleno = 1 (0x1), region = 78 }

</bundles_post_ra>
